<compile_context>
chip_gen: v6e
topology: v6e:2x2x1
jax: 0.10.0
libtpu: 0.0.40
codegen_flags: <defaults>
</compile_context>

<pallas_src>
import functools

import jax
import jax.numpy as jnp
from jax.experimental import pallas as pl
from jax.experimental.pallas import tpu as pltpu

LANE = 128


def _pad_to(v, mult):
    return (v + mult - 1) // mult * mult


def gcn_kernel(a_ref, x_ref, w1_ref, w2_ref, bias_ref, out_ref):
    a = a_ref[...]                      # (N, N) f32, pre-normalized A_hat
    bias = bias_ref[...]                # (2, 128) f32: row0 = b1_pad, row1 = b2_pad
    b1 = bias[0:1, :]
    b2 = bias[1:2, :]

    # Layer 1: relu(A_hat @ (X @ W1) + b1)   — X@W1 first (N << F_in, FLOP-minimal)
    xw = jnp.dot(x_ref[...], w1_ref[...], preferred_element_type=jnp.float32)   # (N, 128)
    h = jnp.maximum(jnp.dot(a, xw, preferred_element_type=jnp.float32) + b1, 0.0)

    # Layer 2: A_hat @ (h @ W2) + b2   (lane-dense padded output, sliced in wrapper)
    hw = jnp.dot(h, w2_ref[...], preferred_element_type=jnp.float32)            # (N, 128)
    out = jnp.dot(a, hw, preferred_element_type=jnp.float32) + b2
    out_ref[...] = out.astype(out_ref.dtype)


def build_normalized_adjacency(edge_index, num_nodes):
    """A_hat = D^{-1/2}(A+I)D^{-1/2}, f32, built once per graph.

    Uses .add so duplicate edges sum like PyG edge weights.  If the input graph
    already contains self-loops this adds +1 on top of their weight, whereas
    PyG's add_remaining_self_loops keeps them at 1; identical for graphs
    without explicit self-loops (the test graph).
    """
    src, dst = edge_index[0], edge_index[1]
    adj = jnp.zeros((num_nodes, num_nodes), jnp.float32).at[dst, src].add(1.0)
    adj = adj + jnp.eye(num_nodes, dtype=jnp.float32)
    deg = adj.sum(axis=1)
    dinv = jax.lax.rsqrt(deg)
    return dinv[:, None] * adj * dinv[None, :]


def prepare_params(w1, b1, w2, b2):
    """Call-invariant weight prep (pad + cast). Do once, reuse across calls."""
    f_in, hidden = w1.shape
    out_dim = w2.shape[1]

    f_pad = _pad_to(f_in, LANE)
    h_pad = _pad_to(hidden, LANE)
    o_pad = _pad_to(out_dim, LANE)
    assert h_pad == o_pad, "bias packing assumes equal padded widths"

    w1_p = jnp.pad(w1, ((0, f_pad - f_in), (0, h_pad - hidden))).astype(jnp.bfloat16)
    w2_p = jnp.pad(w2, ((0, h_pad - hidden), (0, o_pad - out_dim)))  # f32
    bias = jnp.stack([
        jnp.pad(b1, (0, h_pad - hidden)),
        jnp.pad(b2, (0, o_pad - out_dim)),
    ])  # (2, 128) f32

    return {"w1": w1_p, "w2": w2_p, "bias": bias, "out_dim": out_dim}


@functools.partial(jax.jit, static_argnames=("out_dim",))
def gcn_forward(a_hat, x, w1_p, w2_p, bias, *, out_dim):
    n, f_in = x.shape
    f_pad, h_pad = w1_p.shape
    o_pad = w2_p.shape[1]

    # Per-call input prep fuses with the custom call under jit.
    x_p = jnp.pad(x, ((0, 0), (0, f_pad - f_in))).astype(jnp.bfloat16)

    flops = 2 * n * (f_pad * h_pad + n * h_pad + h_pad * o_pad + n * o_pad)
    bytes_accessed = (a_hat.size * 4 + x_p.size * 2 + w1_p.size * 2
                      + w2_p.size * 4 + bias.size * 4 + n * o_pad * 4)

    vmem = pl.BlockSpec(memory_space=pltpu.MemorySpace.VMEM)
    out = pl.pallas_call(
        gcn_kernel,
        out_shape=jax.ShapeDtypeStruct((n, o_pad), jnp.float32),
        in_specs=[vmem] * 5,
        out_specs=vmem,
        cost_estimate=pl.CostEstimate(
            flops=int(flops), transcendentals=0, bytes_accessed=int(bytes_accessed)),
    )(a_hat, x_p, w1_p, w2_p, bias)
    return out[:, :out_dim]


def glorot_uniform(key, shape):
    fan_in, fan_out = shape
    limit = jnp.sqrt(6.0 / (fan_in + fan_out))
    return jax.random.uniform(key, shape, jnp.float32, -limit, limit)


if __name__ == "__main__":
    # Small shapes consistent with the module: in_features fixed at 1000 by __init__.
    num_nodes = 8
    in_features = 1000
    hidden_channels = 32
    out_features = 2

    key = jax.random.PRNGKey(0)
    k_x, k_w1, k_w2 = jax.random.split(key, 3)

    # Node features
    x = jax.random.normal(k_x, (num_nodes, in_features), jnp.float32)

    # Undirected ring graph, both directions, as edge_index [2, E]
    fwd = jnp.stack([jnp.arange(num_nodes), (jnp.arange(num_nodes) + 1) % num_nodes])
    edge_index = jnp.concatenate([fwd, fwd[::-1]], axis=1).astype(jnp.int32)

    # Deterministic parameter init (glorot weights, zero biases — PyG defaults)
    w1 = glorot_uniform(k_w1, (in_features, hidden_channels))
    b1 = jnp.zeros((hidden_channels,), jnp.float32)
    w2 = glorot_uniform(k_w2, (hidden_channels, out_features))
    b2 = jnp.zeros((out_features,), jnp.float32)

    # Call-invariant prep: padded/cast weights and the normalized adjacency.
    params = prepare_params(w1, b1, w2, b2)
    a_hat = build_normalized_adjacency(edge_index, num_nodes)

    out = jax.block_until_ready(
        gcn_forward(a_hat, x, params["w1"], params["w2"], params["bias"],
                    out_dim=params["out_dim"]))
    assert out.shape == (num_nodes, out_features)

    # (a) Precision-matched reference: same bf16 storage for x/W1, f32 A_hat/accum.
    xw_m = jnp.dot(x.astype(jnp.bfloat16), w1.astype(jnp.bfloat16),
                   preferred_element_type=jnp.float32)
    h_m = jnp.maximum(a_hat @ xw_m + b1[None, :], 0.0)
    y_m = a_hat @ (h_m @ w2) + b2[None, :]
    assert jnp.allclose(out, y_m, atol=2e-3, rtol=2e-3)

    # (b) Full-f32 PyG-faithful reference (loose: only bf16 storage of x/W1 differs).
    h_f = jnp.maximum(a_hat @ (x @ w1) + b1[None, :], 0.0)
    y_f = a_hat @ (h_f @ w2) + b2[None, :]
    assert jnp.allclose(out, y_f, atol=2.5e-1, rtol=5e-2)

    print("KERNEL_OK")
</pallas_src>

<mosaic_0001>
module attributes {stable_mosaic.version = 11 : i64} {
  func.func @gcn_kernel(%arg0: memref<8x8xf32, #tpu.memory_space<vmem>>, %arg1: memref<8x1024xbf16, #tpu.memory_space<vmem>>, %arg2: memref<1024x128xbf16, #tpu.memory_space<vmem>>, %arg3: memref<128x128xf32, #tpu.memory_space<vmem>>, %arg4: memref<2x128xf32, #tpu.memory_space<vmem>>, %arg5: memref<8x128xf32, #tpu.memory_space<vmem>>) attributes {dimension_semantics = [], scalar_prefetch = 0 : i64, scratch_operands = 0 : i64, tpu.core_type = #tpu.core_type<tc>} {
    %c0 = arith.constant 0 : index
    %c0_0 = arith.constant 0 : index
    %0 = vector.load %arg0[%c0, %c0_0] : memref<8x8xf32, #tpu.memory_space<vmem>>, vector<8x8xf32>
    %c0_1 = arith.constant 0 : index
    %c0_2 = arith.constant 0 : index
    %1 = vector.load %arg4[%c0_1, %c0_2] : memref<2x128xf32, #tpu.memory_space<vmem>>, vector<2x128xf32>
    %2 = vector.extract_strided_slice %1 {offsets = [0, 0], sizes = [1, 128], strides = [1, 1]} : vector<2x128xf32> to vector<1x128xf32>
    %3 = vector.extract_strided_slice %1 {offsets = [1, 0], sizes = [1, 128], strides = [1, 1]} : vector<2x128xf32> to vector<1x128xf32>
    %c0_3 = arith.constant 0 : index
    %c0_4 = arith.constant 0 : index
    %4 = vector.load %arg1[%c0_3, %c0_4] : memref<8x1024xbf16, #tpu.memory_space<vmem>>, vector<8x1024xbf16>
    %c0_5 = arith.constant 0 : index
    %c0_6 = arith.constant 0 : index
    %5 = vector.load %arg2[%c0_5, %c0_6] : memref<1024x128xbf16, #tpu.memory_space<vmem>>, vector<1024x128xbf16>
    %cst = arith.constant dense<0.000000e+00> : vector<8x128xf32>
    %6 = tpu.matmul %4, %5, %cst {dimension_numbers = #tpu.dot_dimension_numbers<[1], [0], [0], [1], [0, 0, 1, 1], [], []>} : vector<8x1024xbf16>, vector<1024x128xbf16>, vector<8x128xf32> -> vector<8x128xf32>
    %cst_7 = arith.constant dense<0.000000e+00> : vector<8x128xf32>
    %7 = tpu.matmul %0, %6, %cst_7 {dimension_numbers = #tpu.dot_dimension_numbers<[1], [0], [0], [1], [0, 0, 1, 1], [], []>} : vector<8x8xf32>, vector<8x128xf32>, vector<8x128xf32> -> vector<8x128xf32>
    %8 = vector.broadcast %2 : vector<1x128xf32> to vector<8x128xf32>
    %9 = arith.addf %7, %8 : vector<8x128xf32>
    %cst_8 = arith.constant 0.000000e+00 : f32
    %10 = vector.broadcast %cst_8 : f32 to vector<8x128xf32>
    %11 = arith.maximumf %9, %10 : vector<8x128xf32>
    %c0_9 = arith.constant 0 : index
    %c0_10 = arith.constant 0 : index
    %12 = vector.load %arg3[%c0_9, %c0_10] : memref<128x128xf32, #tpu.memory_space<vmem>>, vector<128x128xf32>
    %cst_11 = arith.constant dense<0.000000e+00> : vector<8x128xf32>
    %13 = tpu.matmul %11, %12, %cst_11 {dimension_numbers = #tpu.dot_dimension_numbers<[1], [0], [0], [1], [0, 0, 1, 1], [], []>} : vector<8x128xf32>, vector<128x128xf32>, vector<8x128xf32> -> vector<8x128xf32>
    %cst_12 = arith.constant dense<0.000000e+00> : vector<8x128xf32>
    %14 = tpu.matmul %0, %13, %cst_12 {dimension_numbers = #tpu.dot_dimension_numbers<[1], [0], [0], [1], [0, 0, 1, 1], [], []>} : vector<8x8xf32>, vector<8x128xf32>, vector<8x128xf32> -> vector<8x128xf32>
    %15 = vector.broadcast %3 : vector<1x128xf32> to vector<8x128xf32>
    %16 = arith.addf %14, %15 : vector<8x128xf32>
    %c0_13 = arith.constant 0 : index
    %c0_14 = arith.constant 0 : index
    %17 = vector.load %arg5[%c0_13, %c0_14] : memref<8x128xf32, #tpu.memory_space<vmem>>, vector<8x128xf32>
    tpu.vector_store %arg5[%c0_13, %c0_14], %16 {strides = array<i32>} : memref<8x128xf32, #tpu.memory_space<vmem>>, vector<8x128xf32>,
    return
  }
}

</mosaic_0001>

<bundles_post_ra>
// kernel: gcn_forward.1
= control target key start
LH: loop header
LB: loop body
LE: loop exit
PB: predicated region body
PF: predicated region fallthrough
CT: control target
= control target key end

     0   :  { %10 = vsyncpa [#allocation3], 0  ;;  %s1313_s18 = smov [#allocation2]   ;;  %s1446_s0 = inlined_call_operand.vmem [shape: f32[8,8], index: 0, kind: input, shape index: {}]   ;;  %s1447_s1 = inlined_call_operand.vmem [shape: bf16[8,1024], index: 1, kind: input, shape index: {}]   ;;  %s1448_s2 = inlined_call_operand.hbm [shape: bf16[1024,128], index: 2, kind: input, shape index: {}]   ;;  %s1449_s3 = inlined_call_operand.vmem [shape: f32[128,128], index: 3, kind: input, shape index: {}]   ;;  %s1450_s4 = inlined_call_operand.vmem [shape: f32[2,128], index: 4, kind: input, shape index: {}]   ;;  %s1451_s5 = inlined_call_operand.vmem [shape: f32[8,128], index: 5, kind: output, shape index: {}]  }
   0x1   :  { %s20_s19 = sshll.u32 %s1313_s18, 4  ;;  %s21_s19 = int_to_ptr.vmem [resolvable:$true] %s20_s19 }
   0x2   :  { %s1299_s20 = scalar_lea.vmem %s21_s19, 8192  ;;  %p1304_p1 = scmp.lt.s32.totalorder %s21_s19, %s21_s19 }
   0x3   :  { %p1300_p0 = scmp.ne.s32.totalorder %s21_s19, %s1299_s20  ;;  %p1305_p2 = scmp.lt.s32.totalorder %s1299_s20, %s1299_s20 }
   0x5   :  { %p1306_p3 = por %p1305_p2, %p1304_p1 }
   0x7   :  { %p1307_p4 = pnand %p1306_p3, %p1300_p0 }
   0x9   :  { %1310 = shalt.err (!%p1307_p4)
}
   0xa   :  { %s1314_s21 = smov 64   ;;  %s1315_s22 = smov 4  }
   0xb   :  { %26 = dma.hbm_to_vmem [thread:$0]  %s1448_s2, 8192, %s21_s19, [#allocation3], %s1314_s21, %s1314_s21, %s1315_s22  }
   0xc   :  { %1311 = dma.done.wait [#allocation3], 8192  }
   0xd   :  { %1312 = vsyncadd [#allocation3], 4294959104  ;;  %v1219_v0 = vld [vmem:[#allocation2 + $0x78] sm:$0xff]   ;;  %v1223_v4 = vld [vmem:[#allocation2 + $0x70] sm:$0xff]   ;;  %vm1317_vm0 = vmmov 0   ;;  %vm745_vm1 = vcmask 64512  }
   0xe   :  { %v1220_v1 = vld [vmem:[#allocation2 + $0xf8] sm:$0xff]   ;;  %1060 = vmatprep.subr.bf16.mxu0 %v1219_v0  ;;  %v1224_v5 = vld [vmem:[#allocation2 + $0xf0] sm:$0xff]   ;;  %v1227_v8 = vld [vmem:[#allocation2 + $0x68] sm:$0xff]  }
   0xf   :  { %v1221_v2 = vld [vmem:[#allocation2 + $0x38] sm:$0xff]   ;;  %1082 = vmatprep.subr.bf16.mxu1 %v1220_v1  ;;  %v1225_v6 = vld [vmem:[#allocation2 + $0x30] sm:$0xff]   ;;  %v1228_v9 = vld [vmem:[#allocation2 + $0xe8] sm:$0xff]  }
  0x10   :  { %v1222_v3 = vld [vmem:[#allocation2 + $0xb8] sm:$0xff]   ;;  %1061 = vmatpush3.bf16.msra.mxu0 %v1221_v2  ;;  %v1226_v7 = vld [vmem:[#allocation2 + $0xb0] sm:$0xff]   ;;  %v1229_v10 = vld [vmem:[#allocation2 + $0x28] sm:$0xff]  }
  0x11   :  { %1083 = vmatpush3.bf16.msra.mxu1 %v1222_v3  ;;  %1062 = vmatprep.subr.bf16.mxu0 %v1223_v4  ;;  %v1230_v11 = vld [vmem:[#allocation2 + $0xa8] sm:$0xff]   ;;  %v1231_v12 = vld [vmem:[#allocation2 + $0x60] sm:$0xff]   ;;  %v1235_v16 = vld [vmem:[#allocation2 + $0x58] sm:$0xff]  }
  0x12   :  { %1084 = vmatprep.subr.bf16.mxu1 %v1224_v5  ;;  %v1232_v13 = vld [vmem:[#allocation2 + $0xe0] sm:$0xff]   ;;  %v1236_v17 = vld [vmem:[#allocation2 + $0xd8] sm:$0xff]   ;;  %v1239_v20 = vld [vmem:[#allocation2 + $0x50] sm:$0xff]  }
  0x13   :  { %v1233_v14 = vld [vmem:[#allocation2 + $0x20] sm:$0xff]   ;;  %v1237_v18 = vld [vmem:[#allocation2 + $0x18] sm:$0xff]   ;;  %v1240_v21 = vld [vmem:[#allocation2 + $0xd0] sm:$0xff]  }
  0x14   :  { %1063 = vmatpush3.bf16.msra.mxu0 %v1225_v6  ;;  %v1234_v15 = vld [vmem:[#allocation2 + $0xa0] sm:$0xff]   ;;  %v1238_v19 = vld [vmem:[#allocation2 + $0x98] sm:$0xff]   ;;  %v1241_v22 = vld [vmem:[#allocation2 + $0x10] sm:$0xff]  }
  0x15   :  { %1085 = vmatpush3.bf16.msra.mxu1 %v1226_v7  ;;  %1064 = vmatprep.subr.bf16.mxu0 %v1227_v8  ;;  %v1242_v23 = vld [vmem:[#allocation2 + $0x90] sm:$0xff]   ;;  %v1243_v24 = vld [vmem:[#allocation2 + $0x48] sm:$0xff]   ;;  %v1247_v28 = vld [vmem:[#allocation2 + $0x40] sm:$0xff]  }
  0x16   :  { %1086 = vmatprep.subr.bf16.mxu1 %v1228_v9  ;;  %v1244_v25 = vld [vmem:[#allocation2 + $0xc8] sm:$0xff]   ;;  %v1248_v29 = vld [vmem:[#allocation2 + $0xc0] sm:$0xff]   ;;  %v1255_v38 = vld [vmem:[#allocation2 + $0x178] sm:$0xff]  }
  0x17   :  { %v1245_v26 = vld [vmem:[#allocation2 + $0x8] sm:$0xff]   ;;  %v1249_v30 = vld [vmem:[#allocation2] sm:$0xff]   ;;  %v1256_v39 = vld [vmem:[#allocation2 + $0x1f8] sm:$0xff]  }
  0x18   :  { %1065 = vmatpush3.bf16.msra.mxu0 %v1229_v10  ;;  %v1246_v27 = vld [vmem:[#allocation2 + $0x88] sm:$0xff]   ;;  %v1250_v31 = vld [vmem:[#allocation2 + $0x80] sm:$0xff]   ;;  %v1257_v40 = vld [vmem:[#allocation2 + $0x138] sm:$0xff]  }
  0x19   :  { %1087 = vmatpush3.bf16.msra.mxu1 %v1230_v11  ;;  %1066 = vmatprep.subr.bf16.mxu0 %v1231_v12  ;;  %v37_v32 = vld [vmem:[%s1447_s1] sm:$0xff]  ;;  %v38_v33 = vld [vmem:[%s1447_s1 + $0x8] sm:$0xff]  ;;  %v1258_v41 = vld [vmem:[#allocation2 + $0x1b8] sm:$0xff]   ;;  %v1316_v12 = vmov 0.0  }
  0x1a   :  { %1088 = vmatprep.subr.bf16.mxu1 %v1232_v13  ;;  %v986_v34 = vcombine.low %v37_v32, %v37_v32  ;;  %v987_v35 = vcombine.high %v37_v32, %v37_v32  ;;  %v988_v36 = vcombine.low %v38_v33, %v38_v33  ;;  %v989_v37 = vcombine.high %v38_v33, %v38_v33  ;;  %v1259_v42 = vld [vmem:[#allocation2 + $0x170] sm:$0xff]   ;;  %v1263_v46 = vld [vmem:[#allocation2 + $0x168] sm:$0xff]   ;;  %v1267_v50 = vld [vmem:[#allocation2 + $0x160] sm:$0xff]  }
  0x1b   :  { %v1260_v43 = vld [vmem:[#allocation2 + $0x1f0] sm:$0xff]   ;;  %v1264_v47 = vld [vmem:[#allocation2 + $0x1e8] sm:$0xff]   ;;  %v1268_v51 = vld [vmem:[#allocation2 + $0x1e0] sm:$0xff]  }
  0x1c   :  { %1067 = vmatpush3.bf16.msra.mxu0 %v1233_v14  ;;  %613 = vmatprep.mubr.bf16.mxu0 %v987_v35  ;;  %v1261_v44 = vld [vmem:[#allocation2 + $0x130] sm:$0xff]   ;;  %v1265_v48 = vld [vmem:[#allocation2 + $0x128] sm:$0xff]   ;;  %v1269_v52 = vld [vmem:[#allocation2 + $0x120] sm:$0xff]  }
  0x1d   :  { %1089 = vmatpush3.bf16.msra.mxu1 %v1234_v15  ;;  %1068 = vmatprep.subr.bf16.mxu0 %v1235_v16  ;;  %v1262_v45 = vld [vmem:[#allocation2 + $0x1b0] sm:$0xff]   ;;  %v1266_v49 = vld [vmem:[#allocation2 + $0x1a8] sm:$0xff]   ;;  %v1270_v53 = vld [vmem:[#allocation2 + $0x1a0] sm:$0xff]  }
  0x1e   :  { %1090 = vmatprep.subr.bf16.mxu1 %v1236_v17  ;;  %653 = vmatprep.mubr.bf16.mxu1 %v989_v37  ;;  %v1271_v54 = vld [vmem:[#allocation2 + $0x158] sm:$0xff]   ;;  %v1275_v58 = vld [vmem:[#allocation2 + $0x150] sm:$0xff]   ;;  %v1279_v62 = vld [vmem:[#allocation2 + $0x148] sm:$0xff]  }
  0x1f   :  { %v1272_v55 = vld [vmem:[#allocation2 + $0x1d8] sm:$0xff]   ;;  %v1276_v59 = vld [vmem:[#allocation2 + $0x1d0] sm:$0xff]   ;;  %v1280_v63 = vld [vmem:[#allocation2 + $0x1c8] sm:$0xff]  }
  0x20   :  { %1069 = vmatpush3.bf16.msra.mxu0 %v1237_v18  ;;  %v1273_v56 = vld [vmem:[#allocation2 + $0x118] sm:$0xff]   ;;  %v1277_v60 = vld [vmem:[#allocation2 + $0x110] sm:$0xff]   ;;  %v1281_v0 = vld [vmem:[#allocation2 + $0x108] sm:$0xff]  }
  0x21   :  { %1091 = vmatpush3.bf16.msra.mxu1 %v1238_v19  ;;  %1070 = vmatprep.subr.bf16.mxu0 %v1239_v20  ;;  %v1274_v57 = vld [vmem:[#allocation2 + $0x198] sm:$0xff]   ;;  %v1278_v61 = vld [vmem:[#allocation2 + $0x190] sm:$0xff]   ;;  %v1282_v1 = vld [vmem:[#allocation2 + $0x188] sm:$0xff]  }
  0x22   :  { %1092 = vmatprep.subr.bf16.mxu1 %v1240_v21  ;;  %v1283_v2 = vld [vmem:[#allocation2 + $0x140] sm:$0xff]   ;;  %v39_v6 = vld [vmem:[%s1447_s1 + $0x10] sm:$0xff]  ;;  %v40_v9 = vld [vmem:[%s1447_s1 + $0x18] sm:$0xff] }
  0x23   :  { %v1284_v3 = vld [vmem:[#allocation2 + $0x1c0] sm:$0xff]   ;;  %v990_v7 = vcombine.low %v39_v6, %v39_v6  ;;  %v991_v8 = vcombine.high %v39_v6, %v39_v6  ;;  %v992_v10 = vcombine.low %v40_v9, %v40_v9  ;;  %v993_v11 = vcombine.high %v40_v9, %v40_v9  ;;  %v835_v13 = vld [vmem:[%s1449_s3 + $0x78] sm:$0xff]  ;;  %v834_v14 = vld [vmem:[%s1449_s3 + $0x70] sm:$0xff] }
  0x24   :  { %1071 = vmatpush3.bf16.msra.mxu0 %v1241_v22  ;;  %v1285_v4 = vld [vmem:[#allocation2 + $0x100] sm:$0xff]   ;;  %v833_v15 = vld [vmem:[%s1449_s3 + $0x68] sm:$0xff]  ;;  %v831_v17 = vld [vmem:[%s1449_s3 + $0x58] sm:$0xff] }
  0x25   :  { %1093 = vmatpush3.bf16.msra.mxu1 %v1242_v23  ;;  %1072 = vmatprep.subr.bf16.mxu0 %v1243_v24  ;;  %v1286_v5 = vld [vmem:[#allocation2 + $0x180] sm:$0xff]   ;;  %v830_v18 = vld [vmem:[%s1449_s3 + $0x50] sm:$0xff]  ;;  %v829_v19 = vld [vmem:[%s1449_s3 + $0x48] sm:$0xff] }
  0x26   :  { %1094 = vmatprep.subr.bf16.mxu1 %v1244_v25  ;;  %v832_v16 = vld [vmem:[%s1449_s3 + $0x60] sm:$0xff]  ;;  %v827_v21 = vld [vmem:[%s1449_s3 + $0x38] sm:$0xff]  ;;  %v826_v22 = vld [vmem:[%s1449_s3 + $0x30] sm:$0xff] }
  0x27   :  { %v828_v20 = vld [vmem:[%s1449_s3 + $0x40] sm:$0xff]  ;;  %v825_v23 = vld [vmem:[%s1449_s3 + $0x28] sm:$0xff]  ;;  %v823_v25 = vld [vmem:[%s1449_s3 + $0x18] sm:$0xff] }
  0x28   :  { %1073 = vmatpush3.bf16.msra.mxu0 %v1245_v26  ;;  %v824_v24 = vld [vmem:[%s1449_s3 + $0x20] sm:$0xff] }
  0x29   :  { %1095 = vmatpush3.bf16.msra.mxu1 %v1246_v27  ;;  %1074 = vmatprep.subr.bf16.mxu0 %v1247_v28 }
  0x2a   :  { %1096 = vmatprep.subr.bf16.mxu1 %v1248_v29 }
  0x2c   :  { %1075 = vmatpush3.bf16.msra.mxu0 %v1249_v30 }
  0x2d   :  { %1097 = vmatpush3.bf16.msra.mxu1 %v1250_v31  ;;  %1104 = vmatprep.subr.bf16.mxu0 %v1255_v38 }
  0x2e   :  { %1126 = vmatprep.subr.bf16.mxu1 %v1256_v39 }
  0x2f   :  { %614 = vmatmul.mubr.bf16.vlgmr.msra.gmra.mxu0 %v986_v34 }
  0x30   :  { %654 = vmatmul.mubr.bf16.vlgmr.msra.gmra.mxu1 %v988_v36  ;;  %1105 = vmatpush3.bf16.msra.mxu0 %v1257_v40 }
  0x31   :  { %1127 = vmatpush3.bf16.msra.mxu1 %v1258_v41  ;;  %1106 = vmatprep.subr.bf16.mxu0 %v1259_v42 }
  0x32   :  { %1128 = vmatprep.subr.bf16.mxu1 %v1260_v43  ;;  %693 = vmatprep.mubr.bf16.mxu0 %v991_v8 }
  0x33   :  { %733 = vmatprep.mubr.bf16.mxu1 %v993_v11 }
  0x34   :  { %1107 = vmatpush3.bf16.msra.mxu0 %v1261_v44 }
  0x35   :  { %1129 = vmatpush3.bf16.msra.mxu1 %v1262_v45  ;;  %1108 = vmatprep.subr.bf16.mxu0 %v1263_v46 }
  0x36   :  { %1130 = vmatprep.subr.bf16.mxu1 %v1264_v47 }
  0x38   :  { %1109 = vmatpush3.bf16.msra.mxu0 %v1265_v48 }
  0x39   :  { %1131 = vmatpush3.bf16.msra.mxu1 %v1266_v49  ;;  %1110 = vmatprep.subr.bf16.mxu0 %v1267_v50  ;;  %v35_v49 = vld [vmem:[%s1446_s0] sm:$0xff]  ;;  %v822_v50 = vld [vmem:[%s1449_s3 + $0x10] sm:$0xff] }
  0x3a   :  { %1132 = vmatprep.subr.bf16.mxu1 %v1268_v51  ;;  %v821_v51 = vld [vmem:[%s1449_s3 + $0x8] sm:$0xff] }
  0x3c   :  { %1111 = vmatpush3.bf16.msra.mxu0 %v1269_v52  ;;  %v820_v52 = vld [vmem:[%s1449_s3] sm:$0xff] }
  0x3d   :  { %1133 = vmatpush3.bf16.msra.mxu1 %v1270_v53  ;;  %1112 = vmatprep.subr.bf16.mxu0 %v1271_v54  ;;  %v741_v53 = vlaneseq }
  0x3e   :  { %1134 = vmatprep.subr.bf16.mxu1 %v1272_v55 }
  0x3f   :  { %v742_v54 = vshrl.u32 %v741_v53, 7 }
  0x40   :  { %1113 = vmatpush3.bf16.msra.mxu0 %v1273_v56  ;;  %v36_v56 = vld [vmem:[%s1450_s4] sm:$0x3] }
  0x41   :  { %1135 = vmatpush3.bf16.msra.mxu1 %v1274_v57  ;;  %1114 = vmatprep.subr.bf16.mxu0 %v1275_v58  ;;  %v743_v55 = vsub.s32 0, %v742_v54 }
  0x42   :  { %1136 = vmatprep.subr.bf16.mxu1 %v1276_v59 }
  0x43   :  { %v744_v57 = vrot.slane %v36_v56, %v743_v55 }
  0x44   :  { %1115 = vmatpush3.bf16.msra.mxu0 %v1277_v60 }
  0x45   :  { %1137 = vmatpush3.bf16.msra.mxu1 %v1278_v61  ;;  %1116 = vmatprep.subr.bf16.mxu0 %v1279_v62 }
  0x46   :  { %1138 = vmatprep.subr.bf16.mxu1 %v1280_v63 }
  0x48   :  { %1117 = vmatpush3.bf16.msra.mxu0 %v1281_v0  ;;  %v908_v0 = vsub.s32 1, %v742_v54 }
  0x49   :  { %1139 = vmatpush3.bf16.msra.mxu1 %v1282_v1  ;;  %1118 = vmatprep.subr.bf16.mxu0 %v1283_v2 }
  0x4a   :  { %1140 = vmatprep.subr.bf16.mxu1 %v1284_v3  ;;  %v909_v1 = vrot.slane %v36_v56, %v908_v0 }
  0x4c   :  { %1119 = vmatpush3.bf16.msra.mxu0 %v1285_v4 }
  0x4d   :  { %1141 = vmatpush3.bf16.msra.mxu1 %v1286_v5  ;;  %1169 = vmatprep.subr.mxu0 %v1316_v12 }
  0x4e   :  { %1174 = vmatprep.subr.mxu1 %v1316_v12 }
  0x4f   :  { %694 = vmatmul.mubr.bf16.vlgmr.msra.gmra.mxu0 %v990_v7 }
  0x50   :  { %734 = vmatmul.mubr.bf16.vlgmr.msra.gmra.mxu1 %v992_v10  ;;  %1171 = vmatprep.mubr.msk.f32.mxu0 %vm1317_vm0, %v1316_v12 }
  0x51   :  { %1206 = vmatprep.mubr.msk.f32.mxu1 %vm1317_vm0, %v1316_v12  ;;  %1175 = vmatpush3.msra.mxu1 %v835_v13 }
  0x52   :  { %1176 = vmatprep.subr.mxu1 %v1316_v12 }
  0x53   :  { %1177 = vmatpush3.msra.mxu1 %v834_v14 }
  0x54   :  { %1178 = vmatprep.subr.mxu1 %v1316_v12 }
  0x55   :  { %1179 = vmatpush3.msra.mxu1 %v833_v15 }
  0x56   :  { %1180 = vmatprep.subr.mxu1 %v1316_v12 }
  0x57   :  { %1181 = vmatpush3.msra.mxu1 %v832_v16 }
  0x58   :  { %1182 = vmatprep.subr.mxu1 %v1316_v12 }
  0x59   :  { %1183 = vmatpush3.msra.mxu1 %v831_v17 }
  0x5a   :  { %1184 = vmatprep.subr.mxu1 %v1316_v12 }
  0x5b   :  { %1185 = vmatpush3.msra.mxu1 %v830_v18 }
  0x5c   :  { %1186 = vmatprep.subr.mxu1 %v1316_v12 }
  0x5d   :  { %1187 = vmatpush3.msra.mxu1 %v829_v19 }
  0x5e   :  { %1188 = vmatprep.subr.mxu1 %v1316_v12 }
  0x5f   :  { %1189 = vmatpush3.msra.mxu1 %v828_v20 }
  0x60   :  { %1190 = vmatprep.subr.mxu1 %v1316_v12 }
  0x61   :  { %1191 = vmatpush3.msra.mxu1 %v827_v21 }
  0x62   :  { %1192 = vmatprep.subr.mxu1 %v1316_v12 }
  0x63   :  { %1193 = vmatpush3.msra.mxu1 %v826_v22 }
  0x64   :  { %1194 = vmatprep.subr.mxu1 %v1316_v12 }
  0x65   :  { %1195 = vmatpush3.msra.mxu1 %v825_v23 }
  0x66   :  { %1196 = vmatprep.subr.mxu1 %v1316_v12 }
  0x67   :  { %1197 = vmatpush3.msra.mxu1 %v824_v24 }
  0x68   :  { %1198 = vmatprep.subr.mxu1 %v1316_v12 }
  0x69   :  { %1199 = vmatpush3.msra.mxu1 %v823_v25 }
  0x6a   :  { %1200 = vmatprep.subr.mxu1 %v1316_v12 }
  0x6b   :  { %1201 = vmatpush3.msra.mxu1 %v822_v50 }
  0x6c   :  { %1202 = vmatprep.subr.mxu1 %v1316_v12 }
  0x6d   :  { %1203 = vmatpush3.msra.mxu1 %v821_v51 }
  0x6e   :  { %1204 = vmatprep.subr.mxu1 %v1316_v12 }
  0x6f   :  { %1205 = vmatpush3.msra.mxu1 %v820_v52 }
  0xef   :  { %v1076_v26 = vpop.f32.mrf.mxu0 }
  0xf0   :  { %v1098_v27 = vpop.f32.mrf.mxu1 }
  0xf1   :  { %v1077_v28 = vpop.f32.mrf.mxu0 }
  0xf2   :  { %v1099_v29 = vpop.f32.mrf.mxu1  ;;  %v1078_v34 = vadd.f32 %v1077_v28, %v1076_v26 }
  0xf3   :  { %v1079_v30 = vpop.f32.mrf.mxu0  ;;  %v1100_v35 = vadd.f32 %v1099_v29, %v1098_v27 }
  0xf4   :  { %v1101_v31 = vpop.f32.mrf.mxu1 }
  0xf5   :  { %v1080_v32 = vpop.f32.mrf.mxu0  ;;  %v656_v40 = vadd.f32 %v1100_v35, %v1078_v34 }
  0xf6   :  { %v1102_v33 = vpop.f32.mrf.mxu1 }
 0x10f   :  { %v1120_v36 = vpop.f32.mrf.mxu0 }
 0x110   :  { %v1142_v37 = vpop.f32.mrf.mxu1 }
 0x111   :  { %v1121_v38 = vpop.f32.mrf.mxu0 }
 0x112   :  { %v1143_v39 = vpop.f32.mrf.mxu1  ;;  %v1122_v41 = vadd.f32 %v1121_v38, %v1120_v36 }
 0x113   :  { %v1123_v42 = vpop.f32.mrf.mxu0  ;;  %v1144_v45 = vadd.f32 %v1143_v39, %v1142_v37 }
 0x114   :  { %v1145_v43 = vpop.f32.mrf.mxu1  ;;  %v696_v44 = vadd.f32 %v1122_v41, %v656_v40 }
 0x115   :  { %v1124_v46 = vpop.f32.mrf.mxu0 }
 0x116   :  { %v1146_v47 = vpop.f32.mrf.mxu1  ;;  %v736_v48 = vadd.f32 %v1144_v45, %v696_v44 }
 0x118   :  { %1170 = vmatpush3.msra.mxu0 %v736_v48 }
 0x119   :  { %1172 = vmatmul.mubr.msk.f32.vlgmr.msra.gmra.mxu0 %vm745_vm1, %v35_v49  ;;  %1209 = vmatprep.subr.mxu0 %v1316_v12 }
 0x11a   :  { %1211 = vmatprep.mubr.msk.f32.mxu0 %vm1317_vm0, %v1316_v12 }
 0x1d9   :  { %v815_v58 = vpop.f32.mrf.mxu0 }
 0x1da   :  { %v816_v59 = vadd.f32 %v815_v58, %v744_v57 }
 0x1db   :  { %v1173_v60 = vpop.f32.mrf.mxu0 }
 0x1dc   :  { %v819_v61 = vmax.f32 %v816_v59, 0.0 }
 0x1de   :  { %1207 = vmatmul.mubr.f32.vlgmr.msra.gmra.mxu1 %v819_v61 }
 0x29e   :  { %v902_v62 = vpop.f32.mrf.mxu1 }
 0x29f   :  { %1210 = vmatpush3.msra.mxu0 %v902_v62 }
 0x2a0   :  { %v1208_v63 = vpop.f32.mrf.mxu1  ;;  %1212 = vmatmul.mubr.msk.f32.vlgmr.msra.gmra.mxu0 %vm745_vm1, %v35_v49 }
 0x360   :  { %v976_v2 = vpop.f32.mrf.mxu0 }
 0x361   :  { %v977_v3 = vadd.f32 %v976_v2, %v909_v1 }
 0x362   :  { %v1213_v4 = vpop.f32.mrf.mxu0 }
 0x363   :  { %980 = vst [vmem:[%s1451_s5] sm:$0xff] %v977_v3 }
 0x364   :  { %985 = vsyncpa [#allocation3], 1 }

</bundles_post_ra>
